<compile_context>
chip_gen: v7x
topology: tpu7x:2x2x1
jax: 0.10.0
libtpu: 0.0.40
codegen_flags: <defaults>
</compile_context>

<pallas_src>
import functools

import jax
import jax.numpy as jnp
from jax.experimental import pallas as pl
from jax.experimental.pallas import tpu as pltpu


def _causal_dwconv_kernel(x_ref, w_ref, o_ref, *, K: int):
    """Causal depthwise conv on one (batch, channel-tile) block.

    x_ref: (1, L, Ct)  unpadded input block
    w_ref: (K, Ct)     depthwise taps (PyTorch tap order k = 0..K-1)
    o_ref: (1, L, Ct)

    out[t] = sum_k w[k] * x[t - (K-1) + k]          (x[t'] = 0 for t' < 0)
           = sum_{j=0..K-1} w[K-1-j] * x[t - j]
    """
    L = o_ref.shape[1]
    x = x_ref[0].astype(jnp.float32)            # single resident (L, Ct) slab
    w = w_ref[...].astype(jnp.float32)          # (K, Ct)
    row = jax.lax.broadcasted_iota(jnp.int32, (L, 1), 0)

    acc = x * w[K - 1:K, :]                     # j = 0 tap
    for j in range(1, K):                       # K is small & static
        # shifted[t] = x[t - j]  via XLU sublane rotate; wrapped rows (t < j)
        # are masked to zero to implement the causal left padding in-kernel.
        shifted = pltpu.roll(x, shift=j, axis=0)
        shifted = jnp.where(row >= j, shifted, 0.0)
        acc = acc + shifted * w[K - 1 - j:K - j, :]
    o_ref[0] = acc.astype(o_ref.dtype)


def _vmem_limit_bytes() -> int:
    """Generation-aware scoped-VMEM limit (leaves headroom below physical)."""
    try:
        cap = int(pltpu.get_tpu_info().vmem_capacity_bytes)
    except Exception:
        cap = 64 * 1024 * 1024      # conservative default (v7x-sized VMEM)
    return min((cap * 3) // 4, 100 * 1024 * 1024)


def _pick_channel_tile(C: int, L: int, itemsize: int, B: int,
                       vmem_limit: int) -> int:
    """Largest lane-dense (multiple-of-128) channel tile within the VMEM budget."""

    def vmem_need(ct: int) -> int:
        io = 2 * 2 * L * ct * itemsize          # (input + output) x double buffering
        tmp = 4 * L * ct * 4                    # f32 slab, acc, roll/select temporaries
        return io + tmp

    if C % 128 != 0:
        # Small / odd channel counts: take the full lane axis.
        # TODO(synk): pad C < 128 up to a lane-dense 128 to avoid masked vst stores.
        return C

    budget = (vmem_limit * 3) // 4              # headroom for pipeline bookkeeping
    best = 128
    for ct in range(128, C + 1, 128):
        if C % ct == 0 and vmem_need(ct) <= budget:
            best = max(best, ct)

    # v7x megacore: keep >= 2 parallel grid steps so both TensorCores get work.
    if B == 1 and best == C and (C // 2) % 128 == 0:
        best = C // 2
    return best


def temporal_conv1d(x: jax.Array, weight: jax.Array) -> jax.Array:
    """Causal depthwise conv1d along the middle (sequence) axis.

    x:      (B, L, C)
    weight: PyTorch nn.Conv1d layout (C, 1, K) or (C, K)
    """
    B, L, C = x.shape
    K = weight.shape[-1]

    # (C, 1, K) -> (K, C): tap index on sublanes, channels on lanes.
    w = jnp.asarray(weight.reshape(C, K).T, dtype=x.dtype)

    itemsize = jnp.dtype(x.dtype).itemsize
    vmem_limit = _vmem_limit_bytes()
    Ct = _pick_channel_tile(C, L, itemsize, B, vmem_limit)
    # TODO(synk): halo-tiled L (overlapping K-1 rows) for extremely long sequences
    # where even a 128-lane, full-L block would exceed the VMEM budget.

    kernel = functools.partial(_causal_dwconv_kernel, K=K)

    out = pl.pallas_call(
        kernel,
        out_shape=jax.ShapeDtypeStruct((B, L, C), x.dtype),
        grid_spec=pltpu.PrefetchScalarGridSpec(
            num_scalar_prefetch=0,
            # Channel tile on the outer axis so the (K, Ct) weight block index is
            # constant across the inner batch steps and is not re-DMA'd per step.
            grid=(C // Ct, B),
            in_specs=[
                pl.BlockSpec((1, L, Ct), lambda c, b: (b, 0, c)),
                pl.BlockSpec((K, Ct), lambda c, b: (0, c)),
            ],
            out_specs=pl.BlockSpec((1, L, Ct), lambda c, b: (b, 0, c)),
        ),
        compiler_params=pltpu.CompilerParams(
            dimension_semantics=("parallel", "parallel"),
            vmem_limit_bytes=vmem_limit,
        ),
    )(x, w)
    return out


def _reference(x, weight):
    """Pure-JAX reference matching PyTorch TemporalConv1d.forward."""
    B, L, C = x.shape
    K = weight.shape[-1]
    w = weight.reshape(C, K).astype(jnp.float32)
    xp = jnp.pad(x, ((0, 0), (K - 1, 0), (0, 0))).astype(jnp.float32)
    out = jnp.zeros((B, L, C), jnp.float32)
    for k in range(K):
        out = out + xp[:, k:k + L, :] * w[:, k][None, None, :]
    return out.astype(x.dtype)


if __name__ == "__main__":
    key = jax.random.PRNGKey(0)
    kx, kw = jax.random.split(key)

    batch, seq, inner_dim, conv_dim = 2, 16, 32, 4
    x = jax.random.normal(kx, (batch, seq, inner_dim), dtype=jnp.float32)
    # PyTorch nn.Conv1d weight layout: (out_channels, in_channels/groups, K)
    weight = 0.5 * jax.random.normal(kw, (inner_dim, 1, conv_dim),
                                     dtype=jnp.float32)

    out = temporal_conv1d(x, weight)
    out = jax.block_until_ready(out)

    ref = _reference(x, weight)
    assert out.shape == x.shape and out.dtype == x.dtype
    assert jnp.allclose(out, ref, atol=1e-5, rtol=1e-5)
    print("KERNEL_OK")
</pallas_src>

<mosaic_0001>
module attributes {stable_mosaic.version = 11 : i64} {
  func.func @_causal_dwconv_kernel(%arg0: i32, %arg1: i32, %arg2: memref<1x16x32xf32, #tpu.memory_space<vmem>>, %arg3: memref<4x32xf32, #tpu.memory_space<vmem>>, %arg4: memref<1x16x32xf32, #tpu.memory_space<vmem>>) attributes {dimension_semantics = [#tpu.dimension_semantics<parallel>, #tpu.dimension_semantics<parallel>], iteration_bounds = array<i64: 1, 2>, scalar_prefetch = 0 : i64, scratch_operands = 0 : i64, tpu.core_type = #tpu.core_type<tc>, window_params = [{transform_indices = @transform_0, window_bounds = array<i64: 1, 16, 32>}, {transform_indices = @transform_1, window_bounds = array<i64: 4, 32>}, {transform_indices = @transform_2, window_bounds = array<i64: 1, 16, 32>}]} {
    %c0 = arith.constant 0 : index
    %c0_0 = arith.constant 0 : index
    %c0_1 = arith.constant 0 : index
    %0 = vector.load %arg2[%c0, %c0_0, %c0_1] : memref<1x16x32xf32, #tpu.memory_space<vmem>>, vector<1x16x32xf32>
    %1 = vector.shape_cast %0 : vector<1x16x32xf32> to vector<16x32xf32>
    %c0_2 = arith.constant 0 : index
    %c0_3 = arith.constant 0 : index
    %2 = vector.load %arg3[%c0_2, %c0_3] : memref<4x32xf32, #tpu.memory_space<vmem>>, vector<4x32xf32>
    %3 = tpu.iota {dimensions = array<i32: 0>} : vector<16x1xi32>
    %4 = vector.extract_strided_slice %2 {offsets = [3, 0], sizes = [1, 32], strides = [1, 1]} : vector<4x32xf32> to vector<1x32xf32>
    %5 = vector.broadcast %4 : vector<1x32xf32> to vector<16x32xf32>
    %6 = arith.mulf %1, %5 : vector<16x32xf32>
    %c1_i32 = arith.constant 1 : i32
    %7 = tpu.dynamic_rotate %1 by %c1_i32 dim 0 : vector<16x32xf32>, i32 -> vector<16x32xf32>
    %c1_i32_4 = arith.constant 1 : i32
    %8 = vector.broadcast %c1_i32_4 : i32 to vector<16x1xi32>
    %9 = arith.cmpi sge, %3, %8 : vector<16x1xi32>
    %cst = arith.constant 0.000000e+00 : f32
    %10 = vector.shape_cast %9 : vector<16x1xi1> to vector<16x1xi1>
    %11 = vector.broadcast %10 : vector<16x1xi1> to vector<16x32xi1>
    %12 = vector.broadcast %cst : f32 to vector<16x32xf32>
    %13 = arith.select %11, %7, %12 : vector<16x32xi1>, vector<16x32xf32>
    %14 = vector.extract_strided_slice %2 {offsets = [2, 0], sizes = [1, 32], strides = [1, 1]} : vector<4x32xf32> to vector<1x32xf32>
    %15 = vector.broadcast %14 : vector<1x32xf32> to vector<16x32xf32>
    %16 = arith.mulf %13, %15 : vector<16x32xf32>
    %17 = arith.addf %6, %16 : vector<16x32xf32>
    %c2_i32 = arith.constant 2 : i32
    %18 = tpu.dynamic_rotate %1 by %c2_i32 dim 0 : vector<16x32xf32>, i32 -> vector<16x32xf32>
    %c2_i32_5 = arith.constant 2 : i32
    %19 = vector.broadcast %c2_i32_5 : i32 to vector<16x1xi32>
    %20 = arith.cmpi sge, %3, %19 : vector<16x1xi32>
    %cst_6 = arith.constant 0.000000e+00 : f32
    %21 = vector.shape_cast %20 : vector<16x1xi1> to vector<16x1xi1>
    %22 = vector.broadcast %21 : vector<16x1xi1> to vector<16x32xi1>
    %23 = vector.broadcast %cst_6 : f32 to vector<16x32xf32>
    %24 = arith.select %22, %18, %23 : vector<16x32xi1>, vector<16x32xf32>
    %25 = vector.extract_strided_slice %2 {offsets = [1, 0], sizes = [1, 32], strides = [1, 1]} : vector<4x32xf32> to vector<1x32xf32>
    %26 = vector.broadcast %25 : vector<1x32xf32> to vector<16x32xf32>
    %27 = arith.mulf %24, %26 : vector<16x32xf32>
    %28 = arith.addf %17, %27 : vector<16x32xf32>
    %c3_i32 = arith.constant 3 : i32
    %29 = tpu.dynamic_rotate %1 by %c3_i32 dim 0 : vector<16x32xf32>, i32 -> vector<16x32xf32>
    %c3_i32_7 = arith.constant 3 : i32
    %30 = vector.broadcast %c3_i32_7 : i32 to vector<16x1xi32>
    %31 = arith.cmpi sge, %3, %30 : vector<16x1xi32>
    %cst_8 = arith.constant 0.000000e+00 : f32
    %32 = vector.shape_cast %31 : vector<16x1xi1> to vector<16x1xi1>
    %33 = vector.broadcast %32 : vector<16x1xi1> to vector<16x32xi1>
    %34 = vector.broadcast %cst_8 : f32 to vector<16x32xf32>
    %35 = arith.select %33, %29, %34 : vector<16x32xi1>, vector<16x32xf32>
    %36 = vector.extract_strided_slice %2 {offsets = [0, 0], sizes = [1, 32], strides = [1, 1]} : vector<4x32xf32> to vector<1x32xf32>
    %37 = vector.broadcast %36 : vector<1x32xf32> to vector<16x32xf32>
    %38 = arith.mulf %35, %37 : vector<16x32xf32>
    %39 = arith.addf %28, %38 : vector<16x32xf32>
    %c0_9 = arith.constant 0 : index
    %c0_10 = arith.constant 0 : index
    %c0_11 = arith.constant 0 : index
    %40 = vector.load %arg4[%c0_9, %c0_10, %c0_11] : memref<1x16x32xf32, #tpu.memory_space<vmem>>, vector<1x16x32xf32>
    %41 = vector.shape_cast %40 : vector<1x16x32xf32> to vector<16x32xf32>
    %42 = vector.shape_cast %39 : vector<16x32xf32> to vector<1x16x32xf32>
    tpu.vector_store %arg4[%c0_9, %c0_10, %c0_11], %42 {strides = array<i32>} : memref<1x16x32xf32, #tpu.memory_space<vmem>>, vector<1x16x32xf32>,
    return
  }
  func.func @transform_0(%arg0: i32, %arg1: i32) -> (i32, i32, i32) {
    %c0_i32 = arith.constant 0 : i32
    %c0_i32_0 = arith.constant 0 : i32
    return %arg1, %c0_i32, %arg0 : i32, i32, i32
  }
  func.func @transform_1(%arg0: i32, %arg1: i32) -> (i32, i32) {
    %c0_i32 = arith.constant 0 : i32
    %c0_i32_0 = arith.constant 0 : i32
    return %c0_i32, %arg0 : i32, i32
  }
  func.func @transform_2(%arg0: i32, %arg1: i32) -> (i32, i32, i32) {
    %c0_i32 = arith.constant 0 : i32
    %c0_i32_0 = arith.constant 0 : i32
    return %arg1, %c0_i32, %arg0 : i32, i32, i32
  }
}

</mosaic_0001>

<bundles_post_ra>
// kernel: tpu_custom_call.1
= control target key start
LH: loop header
LB: loop body
LE: loop exit
PB: predicated region body
PF: predicated region fallthrough
CT: control target
= control target key end

     0   :  { %7 = vsyncpa [#allocation3], 0  ;;  %s887_s0 = inlined_call_operand.hbm [shape: f32[2,16,32], index: 0, kind: input, shape index: {}]   ;;  %s888_s1 = inlined_call_operand.hbm [shape: f32[4,32], index: 1, kind: input, shape index: {}]   ;;  %s889_s2 = inlined_call_operand.hbm [shape: f32[2,16,32], index: 2, kind: output, shape index: {}]  }
   0x1   :  { %9 = vsyncpa [#allocation3 + $0x1], 0 }
   0x2   :  { %10 = vsyncpa [#allocation6], 0 }
   0x3   :  { %11 = vsyncpa [#allocation4], 0 }
   0x4   :  { %13 = vsyncpa [#allocation4 + $0x1], 0  ;;  %s653_s9 = smov 0   ;;  %s655_s10 = smov 0  }
   0x5   :  { %s657_s11 = smov 0   ;;  %s659_s12 = smov 0  }
   0x6   :  { %s661_s13 = smov 0   ;;  %s663_s14 = smov 0  }
   0x7 LB: > { %s389_s15 = sadd.s32 4294967295, %s629_s14   ;;  %s390_s16 = sadd.s32 4294967294, %s629_s14   ;;  %s629_s14 = sphi %s663_s14, %s19_s14   ;;  %s625_s13 = sphi %s661_s13, %s917_s13   ;;  %s621_s12 = sphi %s659_s12, %s916_s12   ;;  %s617_s11 = sphi %s657_s11, %s915_s11   ;;  %s613_s10 = sphi %s655_s10, %s914_s10   ;;  %s609_s9 = sphi %s653_s9, %s913_s9  }
   0x8   : > { %s40_s17 = sadd.s32 1, %s617_s11  ;;  %p47_p0 = scmp.ne.s32.totalorder %s617_s11, %s613_s10 }
   0x9   : > { %p48_p1 = scmp.eq.s32.totalorder %s629_s14, 0  ;;  %p53_p2 = scmp.ne.s32.totalorder %s613_s10, %s609_s9 }
   0xa   : > { %p691_p3 = scmp.eq.s32.totalorder %s389_s15, 0  ;;  %p105_p4 = scmp.eq.s32.totalorder %s389_s15, 1 }
   0xb   : > { %p695_p5 = por %p48_p1, %p47_p0  ;;  %p111_p6 = scmp.eq.s32.totalorder %s390_s16, 1 }
   0xc   : > { %s896_s18 = scalar_select %p691_p3, 1, 0 }
   0xd   : > { %p701_p7 = por %p691_p3, %p53_p2  ;;  %p705_p8 = por %p105_p4, %p47_p0 }
   0xe   : > { %p709_p9 = por %p111_p6, %p53_p2  ;;  %p391_p10 = scmp.ge.s32.totalorder %s629_s14, 1 }
   0xf   : > { %s898_s20 = scalar_select %p701_p7, 1, 0 }
  0x10   : > { %s899_s21 = scalar_select %p705_p8, 1, 0 }
  0x11   : > { %s900_s22 = scalar_select %p709_p9, 1, 0 }
  0x12   : > { %p118_p11 = scmp.lt.s32.totalorder %s629_s14, 3  ;;  %s631_s24 = smov [#allocation5]  }
  0x13   : > { %s133_s25 = sshll.u32 %s631_s24, 4  ;;  %p429_p1 = scmp.lt.s32.totalorder %s629_s14, 2  ;;  %s134_s25 = int_to_ptr.vmem [resolvable:$true] %s133_s25 }
  0x14   : > { %p716_p13 = pnand %p391_p10, %p118_p11  ;;  %s28_s28 = sadd.s32 1, %s625_s13 }
  0x15   : > { %p725_p4 = pnand %p429_p1, %p695_p5  ;;  %p736_p6 = scmp.ge.s32.totalorder %s28_s28, 2 }
  0x16   : > { %s901_s23 = scalar_select %p716_p13, 1, 0 }
  0x17   : > { %p416_p0 = pneg %p716_p13  ;;  %s144_s30 = sand.u32 1, %s617_s11  }
  0x18   : > { %s902_s26 = scalar_select %p725_p4, 1, 0 }
  0x19   : > { %p731_p2 = pnand %p416_p0, %p691_p3  ;;  %s485_s5 = scalar_lea.hbm %s888_s1, 64 }
  0x1a   : > { %s904_s29 = scalar_select %p736_p6, 1, 0 }
  0x1b   : > { %p486_p5 = scmp.ne.s32.totalorder %s888_s1, %s485_s5  ;;  %p487_p10 = pneg %p731_p2 }
  0x1c   : > { %p492_p0 = scmp.lt.u32.totalorder %s485_s5, %s888_s1 }
  0x1d   : > { %p488_p11 = pnand %p487_p10, %p486_p5 }
  0x1f   : > { %p489_p1 = pneg %p488_p11 }
  0x21   : > { %p494_p12 = pnand %p492_p0, %p489_p1 }
  0x23   : > { %497 = shalt.err (!%p494_p12)
}
  0x24   : > { %s498_s16 = scalar_lea.vmem %s134_s25, 64  ;;  %p506_p7 = scmp.lt.s32.totalorder %s134_s25, %s134_s25 }
  0x25   : > { %p499_p9 = scmp.ne.s32.totalorder %s134_s25, %s498_s16  ;;  %p507_p13 = scmp.lt.s32.totalorder %s498_s16, %s498_s16 }
  0x27   : > { %p501_p8 = pnand %p499_p9, %p487_p10  ;;  %p508_p4 = por %p507_p13, %p506_p7 }
  0x29   : > { %p502_p3 = pneg %p501_p8 }
  0x2b   : > { %p509_p6 = pnand %p508_p4, %p502_p3 }
  0x2d   : > { %512 = shalt.err (!%p509_p6)
}
  0x2e   : > { %419 = dma.hbm_to_vmem [thread:$0]  (!%p731_p2), %s888_s1, 64, %s134_s25, [#allocation6]  }
  0x2f   : > { %p905_p9 = scmp.ne.s32.totalorder %s904_s29, 0  ;;  %s394_s3 = sshll.u32 %s144_s30, 4 }
  0x30   : > { %s406_s5 = sshll.u32 %s625_s13, 8  ;;  %s148_s8 = scalar_lea.vmem [#allocation2], %s394_s3 }
  0x31   : > { %s919_s28 = smov (%p905_p9, %s28_s28), 0  ;;  %s767_s7 = scalar_lea.hbm %s887_s0, %s406_s5 }
  0x32   : > { %s35_s4 = ssub.s32 %s625_s13, %s919_s28  ;;  %s156_s15 = sshll.u32 %s148_s8, 4  ;;  %s774_s15 = int_to_ptr.vmem [resolvable:$true] %s156_s15 }
  0x33   : > { %p38_p3 = scmp.eq.s32.totalorder %s35_s4, 0  ;;  %s776_s29 = scalar_lea.sflag [#allocation3], %s144_s30 }
  0x34   : > { %s513_s16 = scalar_lea.hbm %s767_s7, 256  ;;  %p906_p8 = scmp.ne.s32.totalorder %s902_s26, 0 }
  0x35   : > { %s772_s25 = scalar_select %p38_p3, %s617_s11, %s40_s17  }
  0x36   : > { %p514_p7 = scmp.ne.s32.totalorder %s767_s7, %s513_s16  ;;  %p515_p12 = pneg %p906_p8 }
  0x37   : > { %s518_s3 = scalar_lea.hbm %s887_s0, 512  ;;  %p519_p2 = scmp.lt.u32.totalorder %s767_s7, %s887_s0 }
  0x38   : > { %p516_p13 = pnand %p515_p12, %p514_p7  ;;  %p520_p6 = scmp.lt.u32.totalorder %s518_s3, %s513_s16 }
  0x39   : > { %p522_p10 = scmp.lt.u32.totalorder %s513_s16, %s767_s7 }
  0x3a   : > { %p517_p4 = pneg %p516_p13  ;;  %p521_p5 = por %p520_p6, %p519_p2 }
  0x3c   : > { %p523_p11 = por %p522_p10, %p521_p5 }
  0x3e   : > { %p524_p1 = pnand %p523_p11, %p517_p4 }
  0x40   : > { %527 = shalt.err (!%p524_p1)
}
  0x41   : > { %s528_s17 = scalar_lea.vmem %s774_s15, 256  ;;  %s632_s30 = smov [#allocation2]  }
  0x42   : > { %p529_p0 = scmp.ne.s32.totalorder %s774_s15, %s528_s17  ;;  %s533_s27 = sshll.u32 %s632_s30, 4  ;;  %s534_s27 = int_to_ptr.vmem [resolvable:$false] %s533_s27 }
  0x43   : > { %s535_s6 = scalar_lea.vmem %s534_s27, 512  ;;  %p536_p7 = scmp.lt.s32.totalorder %s774_s15, %s534_s27 }
  0x44   : > { %p531_p9 = pnand %p529_p0, %p515_p12  ;;  %p537_p13 = scmp.lt.s32.totalorder %s535_s6, %s528_s17 }
  0x46   : > { %p532_p3 = pneg %p531_p9  ;;  %p538_p2 = por %p537_p13, %p536_p7 }
  0x48   : > { %p539_p6 = pnand %p538_p2, %p532_p3 }
  0x4a   : > { %542 = shalt.err (!%p539_p6)
}
  0x4b   : > { %s633_s8 = smov 128   ;;  %s634_s16 = smov 8  }
  0x4c   : > { %423 = dma.hbm_to_vmem [thread:$0]  (!%p906_p8), %s767_s7, 256, %s774_s15, %s776_s29, %s633_s8, %s633_s8, %s634_s16  }
  0x4d   : > { %p907_p12 = scmp.ne.s32.totalorder %s901_s23, 0 }
  0x4e   : > { %s807_s19 = sand.u32 (!%p907_p12), 1, %s613_s10   ;;  %p908_p4 = scmp.ne.s32.totalorder (!%p907_p12), %s898_s20, 0 }
  0x4f   : > { %168 = sbr.rel (%p907_p12) target bundleno = 122 (0x7a), region = 28  ;;  %s398_s24 = sshll.u32 (!%p907_p12), %s807_s19, 4 }
  0x50   : > { %s171_s3 = scalar_lea.sflag (!%p907_p12), [#allocation3], %s807_s19  ;;  %s174_s4 = scalar_lea.vmem (!%p907_p12), [#allocation2], %s398_s24 }
  0x56   : > { %596 = dma.done.wait (%p908_p4), %s171_s3, 256  }
  0x57   : > { %598 = vsyncadd (%p908_p4), %s171_s3, 4294967040  ;;  %p909_p8 = scmp.ne.s32.totalorder %s896_s18, 0 }
  0x59   : > { %600 = dma.done.wait (%p909_p8), [#allocation6], 64  }
  0x5a   : > { %602 = vsyncadd (%p909_p8), [#allocation6], 4294967232  ;;  %v202_v0 = vlaneseq  ;;  %v199_v6 = vld [vmem:[%s174_s4] sm:$0xff]  ;;  %v200_v7 = vld [vmem:[%s174_s4 + $0x8] sm:$0xff]  ;;  %s198_s18 = scalar_lea.vmem [#allocation7], %s398_s24  ;;  %s407_s23 = sshll.u32 %s621_s12, 8 }
  0x5b   : > { %v201_v8 = vld [vmem:[#allocation5] sm:$0xf]  ;;  %v211_v10 = vrot.slane %v199_v6, 7  ;;  %v212_v11 = vrot.slane %v200_v7, 7  ;;  %v232_v13 = vrot.slane %v199_v6, 6  ;;  %v233_v14 = vrot.slane %v200_v7, 6  ;;  %s838_s15 = scalar_lea.hbm %s889_s2, %s407_s23 }
  0x5c   : > { %v203_v1 = vshrl.u32 %v202_v0, 7  ;;  %v253_v16 = vrot.slane %v199_v6, 5  ;;  %v254_v19 = vrot.slane %v200_v7, 5  ;;  %s292_s20 = sshll.u32 %s198_s18, 4  ;;  %vm274_vm6 = vcmask 261120   ;;  %s278_s29 = scalar_lea.sflag [#allocation4], %s807_s19  ;;  %s833_s20 = int_to_ptr.vmem [resolvable:$true] %s292_s20 }
  0x5d   : > { %s543_s12 = scalar_lea.vmem %s833_s20, 256  ;;  %p910_p10 = scmp.ne.s32.totalorder %s899_s21, 0 }
  0x5e   : > { %v207_v2 = vsub.s32 3, %v203_v1  ;;  %v226_v3 = vsub.s32 2, %v203_v1  ;;  %vm213_vm0 = vcmp.lt.s32.totalorder %v203_v1, 1  ;;  %v247_v4 = vsub.s32 1, %v203_v1  ;;  %p544_p5 = scmp.ne.s32.totalorder %s833_s20, %s543_s12  ;;  %s635_s5 = smov [#allocation7]  }
  0x5f   : > { %vm216_vm1 = vcmp.ge.s32.totalorder %v203_v1, 1  ;;  %vm234_vm2 = vcmp.lt.s32.totalorder %v203_v1, 2  ;;  %vm237_vm3 = vcmp.ge.s32.totalorder %v203_v1, 2  ;;  %v268_v5 = vsub.s32 0, %v203_v1  ;;  %s547_s17 = sshll.u32 %s635_s5, 4  ;;  %s548_s17 = int_to_ptr.vmem [resolvable:$false] %s547_s17 }
  0x60   : > { %vm255_vm4 = vcmp.lt.s32.totalorder %v203_v1, 3  ;;  %vm258_vm5 = vcmp.ge.s32.totalorder %v203_v1, 3  ;;  %v208_v9 = vrot.slane %v201_v8, %v207_v2  ;;  %v227_v12 = vrot.slane %v201_v8, %v226_v3  ;;  %p545_p11 = pnand %p544_p5, %p910_p10  ;;  %s549_s30 = scalar_lea.vmem %s548_s17, 512 }
  0x61   : > { %v248_v15 = vrot.slane %v201_v8, %v247_v4  ;;  %v215_v18 = vsel %vm213_vm0, %v212_v11, %v211_v10  ;;  %v269_v20 = vrot.slane %v201_v8, %v268_v5  ;;  %v236_v22 = vsel %vm234_vm2, %v233_v14, %v232_v13  ;;  %p550_p0 = scmp.lt.s32.totalorder %s833_s20, %s548_s17  ;;  %p551_p9 = scmp.lt.s32.totalorder %s549_s30, %s543_s12 }
  0x62   : > { %v209_v17 = vmul.f32 %v208_v9, %v199_v6  ;;  %v222_v21 = vsel %vm216_vm1, %v215_v18, 0.0  ;;  %v210_v23 = vmul.f32 %v208_v9, %v200_v7  ;;  %v214_v24 = vsel %vm213_vm0, %v211_v10, %v212_v11  ;;  %p546_p1 = pneg %p545_p11 }
  0x63   : > { %v228_v25 = vmul.f32 %v227_v12, %v222_v21  ;;  %v243_v26 = vsel %vm237_vm3, %v236_v22, 0.0  ;;  %v257_v27 = vsel %vm255_vm4, %v254_v19, %v253_v16  ;;  %v229_v28 = vmul.f32 %v227_v12, %v214_v24  ;;  %p552_p3 = por %p551_p9, %p550_p0 }
  0x64   : > { %v249_v29 = vmul.f32 %v248_v15, %v243_v26  ;;  %v264_v30 = vsel %vm258_vm5, %v257_v27, 0.0  ;;  %v235_v31 = vsel %vm234_vm2, %v232_v13, %v233_v14  ;;  %v256_v32 = vsel %vm255_vm4, %v253_v16, %v254_v19 }
  0x65   : > { %v230_v33 = vadd.f32 %v228_v25, %v209_v17  ;;  %v270_v34 = vmul.f32 %v269_v20, %v264_v30  ;;  %v231_v35 = vadd.f32 %v229_v28, %v210_v23  ;;  %v250_v36 = vmul.f32 %v248_v15, %v235_v31  ;;  %p553_p7 = pnand %p552_p3, %p546_p1 }
  0x66   : > { %v271_v37 = vmul.f32 %v269_v20, %v256_v32 }
  0x67   : > { %v251_v38 = vadd.f32 %v249_v29, %v230_v33  ;;  %v252_v39 = vadd.f32 %v250_v36, %v231_v35 }
  0x69   : > { %v272_v40 = vadd.f32 %v270_v34, %v251_v38  ;;  %v273_v41 = vadd.f32 %v271_v37, %v252_v39 }
  0x6b   : > { %275 = vst.msk [vmem:[%s198_s18] sm:$0xff] %vm274_vm6, %v272_v40  ;;  %276 = vst.msk [vmem:[%s198_s18 + $0x8] sm:$0xff] %vm274_vm6, %v273_v41 }
  0x6c   : > { %556 = shalt.err (!%p553_p7)
}
  0x6d   : > { %s557_s27 = scalar_lea.hbm %s838_s15, 256  ;;  %s561_s16 = scalar_lea.hbm %s889_s2, 512 }
  0x6e   : > { %p558_p13 = scmp.ne.s32.totalorder %s838_s15, %s557_s27  ;;  %p562_p12 = scmp.lt.u32.totalorder %s838_s15, %s889_s2 }
  0x6f   : > { %p563_p4 = scmp.lt.u32.totalorder %s561_s16, %s557_s27  ;;  %p565_p5 = scmp.lt.u32.totalorder %s557_s27, %s838_s15 }
  0x70   : > { %p559_p2 = pnand %p558_p13, %p910_p10 }
  0x71   : > { %p564_p8 = por %p563_p4, %p562_p12 }
  0x72   : > { %p560_p6 = pneg %p559_p2 }
  0x73   : > { %p566_p11 = por %p565_p5, %p564_p8 }
  0x75   : > { %p567_p1 = pnand %p566_p11, %p560_p6 }
  0x77   : > { %570 = shalt.err (!%p567_p1)
}
  0x78   : > { %s636_s4 = smov 128   ;;  %s637_s18 = smov 8  }
  0x79   : > { %414 = dma.vmem_to_hbm [thread:$0]  (%p910_p10), %s833_s20, 256, %s838_s15, %s278_s29, %s636_s4, %s636_s4, %s637_s18  }
  0x7a PF: > { %s307_s23 = sand.u32 1, %s609_s9   ;;  %p911_p0 = scmp.ne.s32.totalorder %s900_s22, 0 }
  0x7b   : > { %p912_p9 = scmp.ge.s32.totalorder %s629_s14, 2  ;;  %s308_s26 = scalar_lea.sflag [#allocation4], %s307_s23 }
  0x7d   : > { %p425_p3 = pnand %p912_p9, %p911_p0 }
  0x7f   : > { %604 = dma.done.wait (!%p425_p3), %s308_s26, 256  }
  0x80   : > { %606 = vsyncadd (!%p425_p3), %s308_s26, 4294967040  ;;  %s19_s14 = sadd.s32 1, %s629_s14   ;;  %s913_s9 = smov %s613_s10 }
  0x81   : > { %p16_p7 = scmp.ge.s32.totalorder %s19_s14, 4   ;;  %s914_s10 = smov %s617_s11 }
  0x82   : > { %s915_s11 = smov %s772_s25  ;;  %s916_s12 = smov %s625_s13 }
  0x83   : > { %s917_s13 = smov %s919_s28  ;;  %18 = sbr.rel (!%p16_p7) target bundleno = 7 (0x7), region = 78 }
  0x8a   :  { %313 = vsyncpa [#allocation3], 1 }
  0x8b   :  { %315 = vsyncpa [#allocation3 + $0x1], 1 }
  0x8c   :  { %316 = vsyncpa [#allocation6], 1 }
  0x8d   :  { %317 = vsyncpa [#allocation4], 1 }
  0x8e   :  { %319 = vsyncpa [#allocation4 + $0x1], 1 }

</bundles_post_ra>
